<compile_context>
chip_gen: v7x
topology: tpu7x:2x2x1
jax: 0.10.0
libtpu: 0.0.40
codegen_flags: <defaults>
</compile_context>

<pallas_src>
import functools

import numpy as np

import jax
import jax.numpy as jnp
from jax.experimental import pallas as pl
from jax.experimental.pallas import tpu as pltpu


def _round_up(a, b):
    return ((a + b - 1) // b) * b


def _choose_tile_rows(nc, hw, itemsize, target_bytes=4 * 1024 * 1024,
                      min_steps=4):
    """Row tile: ~target_bytes of the *input dtype* per buffer, row-granularity
    matched to the dtype's native sublane tiling, capped so the grid keeps at
    least `min_steps` steps (v7x megacore sharding of the parallel axis)."""
    gran = 8 if itemsize >= 4 else (16 if itemsize == 2 else 32)
    hw_pad = _round_up(max(hw, 1), 128)          # lanes padded to 128 in VMEM
    rows = target_bytes // (hw_pad * itemsize)
    rows = max(gran, (rows // gran) * gran)
    cap = _round_up(max(1, -(-nc // min_steps)), gran)   # ceil(nc/min_steps)
    rows = min(rows, max(gran, cap))
    rows = min(rows, _round_up(nc, gran))
    return int(rows)


def _static_int_p(p):
    """Return p as a small static int if it is concrete & integer-valued."""
    try:
        pv = np.asarray(jax.device_get(p)).reshape(-1)
        if pv.size != 1:
            return None
        pv = float(pv[0])
        if pv == round(pv) and 1.0 <= round(pv) <= 8.0:
            return int(round(pv))
    except Exception:
        return None
    return None


def _row_means_lane_dense(xp, hw):
    """Per-row means of xp (tile_rows, HW) as a lane-dense (1, tile_rows) f32
    row, computed on the MXU:  sums[i, r] = sum_h ones[i, h] * xp[r, h]."""
    ones_lhs = jnp.ones((8, hw), dtype=xp.dtype)
    sums = jax.lax.dot_general(
        ones_lhs, xp,
        dimension_numbers=(((1,), (1,)), ((), ())),     # ones @ xp^T
        preferred_element_type=jnp.float32)              # (8, tile_rows) f32
    return sums[0:1, :] * (1.0 / hw)                     # (1, tile_rows) f32


def _gem_kernel_static_p(x_ref, o_ref, *, eps, p_int, hw):
    # x_ref : (tile_rows, HW) block     o_ref : (1, 1, tile_rows) lane-dense
    x = x_ref[...]
    # clamp + integer power stay in the input dtype on the VPU
    # (bf16 stays bf16 on v6e/v7x; accumulation below is f32 in the MXU).
    xc = jnp.maximum(x, jnp.asarray(eps, dtype=x.dtype))
    xp = xc
    for _ in range(p_int - 1):
        xp = xp * xc
    mean = _row_means_lane_dense(xp, hw)                 # (1, tile_rows) f32
    # mean >= eps**p > 0, so log is finite on all valid rows.
    out = jnp.exp(jnp.log(mean) * (1.0 / p_int))
    o_ref[...] = out.reshape(o_ref.shape).astype(o_ref.dtype)


def _gem_kernel_traced_p(p_ref, x_ref, o_ref, *, eps, hw):
    # General learnable p (traced): x >= eps > 0, so exp(p*log(x)) == x**p.
    p = p_ref[0, 0]
    x = x_ref[...].astype(jnp.float32)
    xc = jnp.maximum(x, eps)
    xp = jnp.exp(jnp.log(xc) * p)
    mean = _row_means_lane_dense(xp, hw)
    out = jnp.exp(jnp.log(mean) / p)
    o_ref[...] = out.reshape(o_ref.shape).astype(o_ref.dtype)


def gem_pallas(x, p, eps=1e-06):
    """x: (N, C, H, W) float array; p: scalar (or shape-(1,)) parameter."""
    N, C, H, W = x.shape
    NC, HW = N * C, H * W
    x2d = x.reshape(NC, HW)

    itemsize = jnp.dtype(x.dtype).itemsize
    tile_rows = _choose_tile_rows(NC, HW, itemsize)
    num_tiles = pl.cdiv(NC, tile_rows)
    grid = (num_tiles,)

    p_static = _static_int_p(p)              # None when p is traced / non-int

    x_spec = pl.BlockSpec((tile_rows, HW), lambda i: (i, 0))
    # Lane-dense output: one (1, tile_rows) row per grid step.
    out_spec = pl.BlockSpec((1, 1, tile_rows), lambda i: (i, 0, 0))
    out_shape = jax.ShapeDtypeStruct((num_tiles, 1, tile_rows), x.dtype)

    n_elems = NC * HW
    if p_static is not None:
        flops = p_static * n_elems + 2 * 8 * n_elems     # VPU chain + MXU reduce
        transcendentals = 2 * NC
    else:
        flops = 2 * n_elems + 2 * 8 * n_elems
        transcendentals = 2 * n_elems + 2 * NC
    cost = pl.CostEstimate(
        flops=flops,
        transcendentals=transcendentals,
        bytes_accessed=n_elems * itemsize + NC * itemsize,
    )
    cparams = pltpu.CompilerParams(
        dimension_semantics=("parallel",),
        vmem_limit_bytes=48 * 1024 * 1024,
    )

    if p_static is not None:
        kernel = functools.partial(_gem_kernel_static_p, eps=float(eps),
                                   p_int=p_static, hw=HW)
        out3 = pl.pallas_call(
            kernel, out_shape=out_shape, grid=grid,
            in_specs=[x_spec], out_specs=out_spec,
            compiler_params=cparams, cost_estimate=cost,
        )(x2d)
    else:
        p_arr = jnp.asarray(p, dtype=jnp.float32).reshape(1, 1)
        p_spec = pl.BlockSpec((1, 1), lambda i: (0, 0),
                              memory_space=pltpu.MemorySpace.SMEM)
        kernel = functools.partial(_gem_kernel_traced_p, eps=float(eps), hw=HW)
        out3 = pl.pallas_call(
            kernel, out_shape=out_shape, grid=grid,
            in_specs=[p_spec, x_spec], out_specs=out_spec,
            compiler_params=cparams, cost_estimate=cost,
        )(p_arr, x2d)

    # Drop the padded tail rows of the last (possibly partial) tile.
    return out3.reshape(num_tiles * tile_rows)[:NC].reshape(N, C, 1, 1)


def gem_reference(x, p, eps=1e-06):
    xf = x.astype(jnp.float32)
    xc = jnp.maximum(xf, eps)
    m = jnp.mean(xc ** p, axis=(-2, -1), keepdims=True)
    return (m ** (1.0 / p)).astype(x.dtype)


if __name__ == "__main__":
    key = jax.random.PRNGKey(0)
    N, C, H, W = 2, 4, 16, 16
    x = jax.random.uniform(key, (N, C, H, W), dtype=jnp.float32)

    # Deterministic parameter init matching GeM.__init__: p = ones(1) * 3
    p_param = jnp.ones((1,), dtype=jnp.float32) * 3.0
    eps = 1e-06

    y_ref = gem_reference(x, 3.0, eps)

    # 1) Concrete p -> static integer-p fast path (no scalar operand).
    y = gem_pallas(x, p_param, eps)
    jax.block_until_ready(y)
    assert y.shape == (N, C, 1, 1), y.shape
    assert jnp.allclose(y, y_ref, rtol=2e-3, atol=1e-5), (
        float(jnp.max(jnp.abs(y - y_ref))))

    # 2) Traced p under jit -> general exp(p*log(x)) path with the SMEM scalar.
    y2 = jax.jit(lambda xx, pp: gem_pallas(xx, pp, eps))(x, p_param)
    jax.block_until_ready(y2)
    assert jnp.allclose(y2, y_ref, rtol=2e-3, atol=1e-5), (
        float(jnp.max(jnp.abs(y2 - y_ref))))

    # 3) bf16 input -> bf16 VPU path with f32 accumulation in the MXU reduce.
    xb = jax.random.uniform(jax.random.PRNGKey(1), (2, 16, 16, 16),
                            dtype=jnp.float32).astype(jnp.bfloat16)
    yb = gem_pallas(xb, p_param, eps)
    jax.block_until_ready(yb)
    yb_ref = gem_reference(xb, 3.0, eps)
    assert yb.shape == (2, 16, 1, 1), yb.shape
    assert jnp.allclose(yb.astype(jnp.float32), yb_ref.astype(jnp.float32),
                        rtol=2e-2, atol=1e-3), (
        float(jnp.max(jnp.abs(yb.astype(jnp.float32)
                              - yb_ref.astype(jnp.float32)))))

    print("KERNEL_OK")
</pallas_src>

<mosaic_0001>
module attributes {stable_mosaic.version = 11 : i64} {
  func.func @_gem_kernel_static_p(%arg0: i32, %arg1: memref<8x256xf32, #tpu.memory_space<vmem>>, %arg2: memref<1x1x8xf32, #tpu.memory_space<vmem>>) attributes {dimension_semantics = [#tpu.dimension_semantics<parallel>], iteration_bounds = array<i64: 1>, scalar_prefetch = 0 : i64, scratch_operands = 0 : i64, tpu.core_type = #tpu.core_type<tc>, window_params = [{transform_indices = @transform_0, window_bounds = array<i64: 8, 256>}, {transform_indices = @transform_1, window_bounds = array<i64: 1, 1, 8>}]} {
    %c0 = arith.constant 0 : index
    %c0_0 = arith.constant 0 : index
    %0 = vector.load %arg1[%c0, %c0_0] : memref<8x256xf32, #tpu.memory_space<vmem>>, vector<8x256xf32>
    %cst = arith.constant 9.99999997E-7 : f32
    %1 = vector.broadcast %cst : f32 to vector<8x256xf32>
    %2 = arith.maximumf %0, %1 : vector<8x256xf32>
    %3 = arith.mulf %2, %2 : vector<8x256xf32>
    %4 = arith.mulf %3, %2 : vector<8x256xf32>
    %cst_1 = arith.constant 1.000000e+00 : f32
    %5 = vector.broadcast %cst_1 : f32 to vector<8x256xf32>
    %cst_2 = arith.constant dense<0.000000e+00> : vector<8x8xf32>
    %6 = tpu.matmul %5, %4, %cst_2 {dimension_numbers = #tpu.dot_dimension_numbers<[1], [1], [0], [0], [0, 0, 1, 0], [], []>} : vector<8x256xf32>, vector<8x256xf32>, vector<8x8xf32> -> vector<8x8xf32>
    %7 = vector.extract_strided_slice %6 {offsets = [0, 0], sizes = [1, 8], strides = [1, 1]} : vector<8x8xf32> to vector<1x8xf32>
    %cst_3 = arith.constant 3.906250e-03 : f32
    %8 = vector.broadcast %cst_3 : f32 to vector<1x8xf32>
    %9 = arith.mulf %7, %8 : vector<1x8xf32>
    %10 = math.log %9 : vector<1x8xf32>
    %cst_4 = arith.constant 0.333333343 : f32
    %11 = vector.broadcast %cst_4 : f32 to vector<1x8xf32>
    %12 = arith.mulf %10, %11 : vector<1x8xf32>
    %13 = math.exp %12 : vector<1x8xf32>
    %14 = vector.shape_cast %13 : vector<1x8xf32> to vector<1x1x8xf32>
    %c0_5 = arith.constant 0 : index
    %c0_6 = arith.constant 0 : index
    %c0_7 = arith.constant 0 : index
    %15 = vector.load %arg2[%c0_5, %c0_6, %c0_7] : memref<1x1x8xf32, #tpu.memory_space<vmem>>, vector<1x1x8xf32>
    tpu.vector_store %arg2[%c0_5, %c0_6, %c0_7], %14 {strides = array<i32>} : memref<1x1x8xf32, #tpu.memory_space<vmem>>, vector<1x1x8xf32>,
    return
  }
  func.func @transform_0(%arg0: i32) -> (i32, i32) {
    %c0_i32 = arith.constant 0 : i32
    %c0_i32_0 = arith.constant 0 : i32
    return %arg0, %c0_i32 : i32, i32
  }
  func.func @transform_1(%arg0: i32) -> (i32, i32, i32) {
    %c0_i32 = arith.constant 0 : i32
    %c0_i32_0 = arith.constant 0 : i32
    %c0_i32_1 = arith.constant 0 : i32
    return %arg0, %c0_i32, %c0_i32_0 : i32, i32, i32
  }
}

</mosaic_0001>

<bundles_post_ra>
// kernel: tpu_custom_call.1
= control target key start
LH: loop header
LB: loop body
LE: loop exit
PB: predicated region body
PF: predicated region fallthrough
CT: control target
= control target key end

     0   :  { %6 = vsyncpa [#allocation3], 0  ;;  %s214_s0 = inlined_call_operand.hbm [shape: f32[8,256], index: 0, kind: input, shape index: {}]   ;;  %s215_s1 = inlined_call_operand.hbm [shape: f32[1,1,8], index: 1, kind: output, shape index: {}]  }
   0x1   :  { %7 = vsyncpa [#allocation4], 0  ;;  %s177_s6 = smov [#allocation2]   ;;  %s129_s10 = scalar_lea.hbm %s214_s0, 256 }
   0x2   :  { %s14_s7 = sshll.u32 %s177_s6, 4  ;;  %p130_p0 = scmp.ne.s32.totalorder %s214_s0, %s129_s10  ;;  %s15_s7 = int_to_ptr.vmem [resolvable:$true] %s14_s7 }
   0x3   :  { %p133_p1 = scmp.lt.u32.totalorder %s129_s10, %s214_s0 }
   0x5   :  { %p135_p2 = pnand %p133_p1, %p130_p0 }
   0x7   :  { %138 = shalt.err (!%p135_p2)
}
   0x8   :  { %s139_s15 = scalar_lea.vmem %s15_s7, 256  ;;  %p144_p4 = scmp.lt.s32.totalorder %s15_s7, %s15_s7 }
   0x9   :  { %p140_p3 = scmp.ne.s32.totalorder %s15_s7, %s139_s15  ;;  %p145_p5 = scmp.lt.s32.totalorder %s139_s15, %s139_s15 }
   0xb   :  { %p146_p6 = por %p145_p5, %p144_p4 }
   0xd   :  { %p147_p7 = pnand %p146_p6, %p140_p3 }
   0xf   :  { %150 = shalt.err (!%p147_p7)
}
  0x10   :  { %17 = dma.hbm_to_vmem [thread:$0]  %s214_s0, 256, %s15_s7, [#allocation3]  }
  0x11   :  { %173 = dma.done.wait [#allocation3], 256  }
  0x12   :  { %174 = vsyncadd [#allocation3], 4294967040  ;;  %v178_v0 = vmov 1.0   ;;  %v22_v1 = vld [vmem:[#allocation2 + $0x8] sm:$0xff]  ;;  %v21_v2 = vld [vmem:[#allocation2] sm:$0xff]  ;;  %s179_s0 = smov [#allocation5]  }
  0x13   :  { %93 = vmatprep.mubr.f32.mxu0 %v178_v0  ;;  %v24_v3 = vmax.f32 %v22_v1, 1e-06  ;;  %v23_v4 = vmax.f32 %v21_v2, 1e-06  ;;  %s113_s18 = sshll.u32 %s179_s0, 4  ;;  %vm105_vm0 = vcmask 57344   ;;  %s114_s18 = int_to_ptr.vmem [resolvable:$true] %s113_s18 }
  0x14   :  { %s151_s19 = scalar_lea.vmem %s114_s18, 16  ;;  %s155_s20 = scalar_lea.vmem %s114_s18, 32 }
  0x15   :  { %v26_v5 = vmul.f32 %v24_v3, %v24_v3  ;;  %v25_v6 = vmul.f32 %v23_v4, %v23_v4  ;;  %p152_p8 = scmp.ne.s32.totalorder %s114_s18, %s151_s19  ;;  %p156_p9 = scmp.lt.s32.totalorder %s114_s18, %s114_s18 }
  0x16   :  { %p157_p10 = scmp.lt.s32.totalorder %s155_s20, %s151_s19 }
  0x17   :  { %v28_v7 = vmul.f32 %v26_v5, %v24_v3  ;;  %v27_v8 = vmul.f32 %v25_v6, %v23_v4 }
  0x18   :  { %p158_p11 = por %p157_p10, %p156_p9 }
  0x19   :  { %29 = vmatprep.subr.mxu0 %v28_v7 }
  0x1a   :  { %30 = vmatpush1.xpose.msra.mxu0 %v27_v8  ;;  %p159_p12 = pnand %p158_p11, %p152_p8 }
  0x1d   :  { %94 = vmatmul.mubr.f32.vlgmr.msra.gmra.mrb[0].mxu0 %v178_v0 }
  0xf0   :  { %v95_v9 = vpop.f32.mrb[0].mxu0 }
  0xf1   :  { %v99_v10 = vmul.f32 0.00390625, %v95_v9  ;;  %v97_v11 = vpop.f32.mrb[1].mxu0 }
  0xf3   :  { %125 = vlog2.f32 %v99_v10 }
  0xfd   :  { %v126_v12 = vpop.eup %125 }
  0xfe   :  { %v101_v13 = vmul.f32 0.6931472, %v126_v12 }
 0x100   :  { %v102_v14 = vmul.f32 0.33333334, %v101_v13 }
 0x102   :  { %v103_v15 = vmul.f32 1.442695, %v102_v14 }
 0x104   :  { %127 = vpow2.f32 %v103_v15 }
 0x10e   :  { %v128_v16 = vpop.eup %127 }
 0x10f   :  { %106 = vst.msk [vmem:[#allocation5] sm:$0x1] %vm105_vm0, %v128_v16 }
 0x110   :  { %162 = shalt.err (!%p159_p12)
}
 0x111   :  { %s163_s23 = scalar_lea.hbm %s215_s1, 16 }
 0x112   :  { %p164_p13 = scmp.ne.s32.totalorder %s215_s1, %s163_s23  ;;  %p167_p0 = scmp.lt.u32.totalorder %s163_s23, %s215_s1 }
 0x114   :  { %p169_p1 = pnand %p167_p0, %p164_p13 }
 0x116   :  { %172 = shalt.err (!%p169_p1)
}
 0x117   :  { %116 = dma.vmem_to_hbm [thread:$0]  %s114_s18, 16, %s215_s1, [#allocation4]  }
 0x118   :  { %175 = dma.done.wait [#allocation4], 16  }
 0x119   :  { %176 = vsyncadd [#allocation4], 4294967280 }
 0x11a   :  { %120 = vsyncpa [#allocation3], 1 }
 0x11b   :  { %121 = vsyncpa [#allocation4], 1 }

</bundles_post_ra>
